<compile_context>
chip_gen: v6e
topology: v6e:2x2x1
jax: 0.10.0
libtpu: 0.0.40
codegen_flags: <defaults>
</compile_context>

<pallas_src>
import functools
import math

import jax
import jax.numpy as jnp
from jax.experimental import pallas as pl
from jax.experimental.pallas import tpu as pltpu

LN_EPS = 1e-5  # nn.LayerNorm default


def _fourier_kernel(x_ref, chsh_ref, cs_ref, ss_ref, g_ref, b_ref, o_ref,
                    *, tb: int, h_true: int, mm_dtype):
    """One grid step = TB batch rows flattened into a lane-dense (TB*S, Hp) slab.

    x_ref:    (TB*S, Hp)   zero-padded input slab (f32)
    chsh_ref: (Hp, 2*Hp)   fused, zero-padded [Ch | Sh] DFT weight
    cs_ref:   (S, S)       cos DFT matrix over the sequence axis
    ss_ref:   (S, S)       sin DFT matrix over the sequence axis
    g_ref:    (1, Hp)      LayerNorm gamma (zero in padded lanes)
    b_ref:    (1, Hp)      LayerNorm beta  (zero in padded lanes)
    o_ref:    (TB*S, Hp)   output slab
    """
    rows, hp = x_ref.shape
    s = rows // tb

    x = x_ref[...]  # (TB*S, Hp) f32; padded lanes are exactly zero.

    # Stage 1 (fused H-side DFT): a single wide MXU matmul for the whole slab.
    #   y[:, :Hp] = x @ Ch_pad   ,   y[:, Hp:] = x @ Sh_pad
    y = jnp.dot(x.astype(mm_dtype), chsh_ref[...].astype(mm_dtype),
                preferred_element_type=jnp.float32)          # (TB*S, 2*Hp)

    cs = cs_ref[...].astype(mm_dtype)
    ss = ss_ref[...].astype(mm_dtype)
    # Hoist the gamma/beta broadcasts out of the unrolled loop (no CSE in JAX).
    gamma = jnp.broadcast_to(g_ref[...], (s, hp))
    beta = jnp.broadcast_to(b_ref[...], (s, hp))
    inv_h = jnp.float32(1.0 / h_true)

    # Stage 2 (S-side DFT + residual + LayerNorm), statically unrolled over TB.
    for b in range(tb):
        r0, r1 = b * s, (b + 1) * s
        xc = y[r0:r1, :hp]        # x_b @ Ch   (padded cols are zero)
        xs = y[r0:r1, hp:]        # x_b @ Sh
        real = (jnp.dot(cs, xc.astype(mm_dtype), preferred_element_type=jnp.float32)
                - jnp.dot(ss, xs.astype(mm_dtype), preferred_element_type=jnp.float32))

        yb = x[r0:r1, :] + real   # (S, Hp); padded lanes stay exactly zero.

        # One-pass LayerNorm statistics over the true H lanes (padding adds 0).
        sum_y = jnp.sum(yb, axis=-1, keepdims=True)
        sum_y2 = jnp.sum(yb * yb, axis=-1, keepdims=True)
        mean = sum_y * inv_h
        var = sum_y2 * inv_h - mean * mean
        normed = (yb - mean) * jax.lax.rsqrt(var + LN_EPS)
        o_ref[r0:r1, :] = normed * gamma + beta


def _dft_matrices(n: int):
    # cos/sin(2*pi*m*s/n). Reduce (m*s) mod n in int32 BEFORE scaling so the
    # phase argument stays exact at large n (f32 m*s loses integers past 2^24).
    idx = jnp.arange(n, dtype=jnp.int32)
    prod_mod_n = (idx[:, None] * idx[None, :]) % n
    ang = (2.0 * math.pi / n) * prod_mod_n.astype(jnp.float32)
    return jnp.cos(ang), jnp.sin(ang)  # symmetric (n, n)


def _choose_block_batch(batch: int, seq: int, hp: int,
                        max_rows: int = 1024, max_unroll: int = 8,
                        max_tile_bytes: int = 4 * 1024 * 1024) -> int:
    """Largest TB dividing `batch` whose (TB*S, Hp) slab stays small & aligned."""
    tb = 1
    for cand in range(1, min(batch, max_unroll) + 1):
        rows = cand * seq
        if (batch % cand == 0 and rows <= max_rows and rows % 8 == 0
                and rows * hp * 4 <= max_tile_bytes):
            tb = cand
    if (tb * seq) % 8 != 0:
        tb = batch  # full-array block is always a legal tile shape
    return tb


def _vmem_limit_bytes(tb: int, seq: int, hp: int) -> int:
    f32 = 4
    rows = tb * seq
    io_tiles = 2 * 2 * rows * hp * f32                         # x + out, double-buffered
    consts = 2 * (hp * 2 * hp + 2 * seq * seq + 2 * hp) * f32  # DFT mats + gamma/beta
    temps = (rows * 2 * hp + 6 * seq * hp) * f32               # y + per-batch temporaries
    needed = io_tiles + consts + temps
    # Generous headroom, clamped to stay inside every generation's physical VMEM
    # (v7x has only 64 MiB per TensorCore).
    return int(min(max(4 * needed, 16 * 1024 * 1024), 48 * 1024 * 1024))


def fourier_forward(x: jnp.ndarray, gamma: jnp.ndarray, beta: jnp.ndarray,
                    *, matmul_dtype=jnp.float32) -> jnp.ndarray:
    """x: (B, S, H) float; gamma, beta: (H,). Returns (B, S, H) float32.

    matmul_dtype: dtype fed to the MXU (accumulation is always f32). Use
    jnp.bfloat16 at production S/H for higher MXU throughput.
    """
    B, S, H = x.shape
    Hp = max(128, -(-H // 128) * 128)          # lane-dense hidden dim
    TB = _choose_block_batch(B, S, Hp)
    rows = TB * S
    grid = (B // TB,)

    cs, ss = _dft_matrices(S)                  # (S, S)
    ch, sh = _dft_matrices(H)                  # (H, H)

    # Fused + zero-padded H-side weight:  x_pad @ chsh = [x@Ch | 0 | x@Sh | 0]
    chsh = jnp.zeros((Hp, 2 * Hp), jnp.float32)
    chsh = chsh.at[:H, :H].set(ch)
    chsh = chsh.at[:H, Hp:Hp + H].set(sh)

    g_p = jnp.zeros((1, Hp), jnp.float32).at[0, :H].set(gamma.astype(jnp.float32))
    b_p = jnp.zeros((1, Hp), jnp.float32).at[0, :H].set(beta.astype(jnp.float32))

    x32 = x.astype(jnp.float32)
    if Hp != H:
        x32 = jnp.pad(x32, ((0, 0), (0, 0), (0, Hp - H)))
    x2 = x32.reshape(B * S, Hp)                # (8,128)-aligned, lane-dense slab

    kernel = functools.partial(_fourier_kernel, tb=TB, h_true=H,
                               mm_dtype=matmul_dtype)
    const2d = lambda shape: pl.BlockSpec(shape, lambda i: (0, 0))

    out2 = pl.pallas_call(
        kernel,
        out_shape=jax.ShapeDtypeStruct((B * S, Hp), jnp.float32),
        grid_spec=pltpu.PrefetchScalarGridSpec(
            num_scalar_prefetch=0,
            grid=grid,
            in_specs=[
                pl.BlockSpec((rows, Hp), lambda i: (i, 0)),   # x slab
                const2d((Hp, 2 * Hp)),                        # fused [Ch | Sh]
                const2d((S, S)),                              # Cs
                const2d((S, S)),                              # Ss
                const2d((1, Hp)),                             # gamma
                const2d((1, Hp)),                             # beta
            ],
            out_specs=pl.BlockSpec((rows, Hp), lambda i: (i, 0)),
        ),
        compiler_params=pltpu.CompilerParams(
            dimension_semantics=("parallel",),   # batch axis shards across TCs on v7x
            vmem_limit_bytes=_vmem_limit_bytes(TB, S, Hp),
        ),
    )(x2, chsh, cs, ss, g_p, b_p)

    out = out2.reshape(B, S, Hp)
    return out[:, :, :H] if Hp != H else out


def _reference(x, gamma, beta):
    z = jnp.fft.fft(x.astype(jnp.complex64), axis=-1)
    z = jnp.fft.fft(z, axis=-2)
    y = x + jnp.real(z)
    mean = jnp.mean(y, axis=-1, keepdims=True)
    var = jnp.mean((y - mean) ** 2, axis=-1, keepdims=True)
    return (y - mean) / jnp.sqrt(var + LN_EPS) * gamma + beta


if __name__ == "__main__":
    key = jax.random.PRNGKey(0)
    B, S, H = 2, 8, 32  # batch, seq, hidden
    x = jax.random.normal(key, (B, S, H), dtype=jnp.float32)

    # Deterministic parameters (nn.LayerNorm default init).
    gamma = jnp.ones((H,), dtype=jnp.float32)
    beta = jnp.zeros((H,), dtype=jnp.float32)

    out = fourier_forward(x, gamma, beta)
    out = jax.block_until_ready(out)

    ref = _reference(x, gamma, beta)
    assert out.shape == (B, S, H) and out.dtype == jnp.float32
    assert jnp.allclose(out, ref, atol=1e-3, rtol=1e-3), float(jnp.max(jnp.abs(out - ref)))
    print("KERNEL_OK")
</pallas_src>

<mosaic_0001>
module attributes {stable_mosaic.version = 11 : i64} {
  func.func @_fourier_kernel(%arg0: i32, %arg1: memref<16x128xf32, #tpu.memory_space<vmem>>, %arg2: memref<128x256xf32, #tpu.memory_space<vmem>>, %arg3: memref<8x8xf32, #tpu.memory_space<vmem>>, %arg4: memref<8x8xf32, #tpu.memory_space<vmem>>, %arg5: memref<1x128xf32, #tpu.memory_space<vmem>>, %arg6: memref<1x128xf32, #tpu.memory_space<vmem>>, %arg7: memref<16x128xf32, #tpu.memory_space<vmem>>) attributes {dimension_semantics = [#tpu.dimension_semantics<parallel>], iteration_bounds = array<i64: 1>, scalar_prefetch = 0 : i64, scratch_operands = 0 : i64, tpu.core_type = #tpu.core_type<tc>, window_params = [{transform_indices = @transform_0, window_bounds = array<i64: 16, 128>}, {pipeline_mode = #tpu.pipeline_mode<synchronous>, transform_indices = @transform_1, window_bounds = array<i64: 128, 256>}, {pipeline_mode = #tpu.pipeline_mode<synchronous>, transform_indices = @transform_2, window_bounds = array<i64: 8, 8>}, {pipeline_mode = #tpu.pipeline_mode<synchronous>, transform_indices = @transform_3, window_bounds = array<i64: 8, 8>}, {pipeline_mode = #tpu.pipeline_mode<synchronous>, transform_indices = @transform_4, window_bounds = array<i64: 1, 128>}, {pipeline_mode = #tpu.pipeline_mode<synchronous>, transform_indices = @transform_5, window_bounds = array<i64: 1, 128>}, {transform_indices = @transform_6, window_bounds = array<i64: 16, 128>}]} {
    %c0 = arith.constant 0 : index
    %c0_0 = arith.constant 0 : index
    %0 = vector.load %arg1[%c0, %c0_0] : memref<16x128xf32, #tpu.memory_space<vmem>>, vector<16x128xf32>
    %c0_1 = arith.constant 0 : index
    %c0_2 = arith.constant 0 : index
    %1 = vector.load %arg2[%c0_1, %c0_2] : memref<128x256xf32, #tpu.memory_space<vmem>>, vector<128x256xf32>
    %cst = arith.constant dense<0.000000e+00> : vector<16x256xf32>
    %2 = tpu.matmul %0, %1, %cst {dimension_numbers = #tpu.dot_dimension_numbers<[1], [0], [0], [1], [0, 0, 1, 1], [], []>} : vector<16x128xf32>, vector<128x256xf32>, vector<16x256xf32> -> vector<16x256xf32>
    %c0_3 = arith.constant 0 : index
    %c0_4 = arith.constant 0 : index
    %3 = vector.load %arg3[%c0_3, %c0_4] : memref<8x8xf32, #tpu.memory_space<vmem>>, vector<8x8xf32>
    %c0_5 = arith.constant 0 : index
    %c0_6 = arith.constant 0 : index
    %4 = vector.load %arg4[%c0_5, %c0_6] : memref<8x8xf32, #tpu.memory_space<vmem>>, vector<8x8xf32>
    %c0_7 = arith.constant 0 : index
    %c0_8 = arith.constant 0 : index
    %5 = vector.load %arg5[%c0_7, %c0_8] : memref<1x128xf32, #tpu.memory_space<vmem>>, vector<1x128xf32>
    %6 = vector.shape_cast %5 : vector<1x128xf32> to vector<1x128xf32>
    %7 = vector.broadcast %6 : vector<1x128xf32> to vector<8x128xf32>
    %c0_9 = arith.constant 0 : index
    %c0_10 = arith.constant 0 : index
    %8 = vector.load %arg6[%c0_9, %c0_10] : memref<1x128xf32, #tpu.memory_space<vmem>>, vector<1x128xf32>
    %9 = vector.shape_cast %8 : vector<1x128xf32> to vector<1x128xf32>
    %10 = vector.broadcast %9 : vector<1x128xf32> to vector<8x128xf32>
    %11 = vector.extract_strided_slice %2 {offsets = [0, 0], sizes = [8, 128], strides = [1, 1]} : vector<16x256xf32> to vector<8x128xf32>
    %12 = vector.extract_strided_slice %2 {offsets = [0, 128], sizes = [8, 128], strides = [1, 1]} : vector<16x256xf32> to vector<8x128xf32>
    %cst_11 = arith.constant dense<0.000000e+00> : vector<8x128xf32>
    %13 = tpu.matmul %3, %11, %cst_11 {dimension_numbers = #tpu.dot_dimension_numbers<[1], [0], [0], [1], [0, 0, 1, 1], [], []>} : vector<8x8xf32>, vector<8x128xf32>, vector<8x128xf32> -> vector<8x128xf32>
    %cst_12 = arith.constant dense<0.000000e+00> : vector<8x128xf32>
    %14 = tpu.matmul %4, %12, %cst_12 {dimension_numbers = #tpu.dot_dimension_numbers<[1], [0], [0], [1], [0, 0, 1, 1], [], []>} : vector<8x8xf32>, vector<8x128xf32>, vector<8x128xf32> -> vector<8x128xf32>
    %15 = arith.subf %13, %14 : vector<8x128xf32>
    %16 = vector.extract_strided_slice %0 {offsets = [0, 0], sizes = [8, 128], strides = [1, 1]} : vector<16x128xf32> to vector<8x128xf32>
    %17 = arith.addf %16, %15 : vector<8x128xf32>
    %cst_13 = arith.constant dense<0.000000e+00> : vector<8xf32>
    %18 = vector.multi_reduction <add>, %17, %cst_13 [1] : vector<8x128xf32> to vector<8xf32>
    %19 = vector.shape_cast %18 : vector<8xf32> to vector<8x1xf32>
    %20 = arith.mulf %17, %17 : vector<8x128xf32>
    %cst_14 = arith.constant dense<0.000000e+00> : vector<8xf32>
    %21 = vector.multi_reduction <add>, %20, %cst_14 [1] : vector<8x128xf32> to vector<8xf32>
    %22 = vector.shape_cast %21 : vector<8xf32> to vector<8x1xf32>
    %cst_15 = arith.constant 3.125000e-02 : f32
    %23 = vector.broadcast %cst_15 : f32 to vector<8x1xf32>
    %24 = arith.mulf %19, %23 : vector<8x1xf32>
    %cst_16 = arith.constant 3.125000e-02 : f32
    %25 = vector.broadcast %cst_16 : f32 to vector<8x1xf32>
    %26 = arith.mulf %22, %25 : vector<8x1xf32>
    %27 = arith.mulf %24, %24 : vector<8x1xf32>
    %28 = arith.subf %26, %27 : vector<8x1xf32>
    %29 = vector.broadcast %24 : vector<8x1xf32> to vector<8x128xf32>
    %30 = arith.subf %17, %29 : vector<8x128xf32>
    %cst_17 = arith.constant 9.99999974E-6 : f32
    %31 = vector.broadcast %cst_17 : f32 to vector<8x1xf32>
    %32 = arith.addf %28, %31 : vector<8x1xf32>
    %33 = math.rsqrt %32 : vector<8x1xf32>
    %34 = vector.broadcast %33 : vector<8x1xf32> to vector<8x128xf32>
    %35 = arith.mulf %30, %34 : vector<8x128xf32>
    %36 = arith.mulf %35, %7 : vector<8x128xf32>
    %37 = arith.addf %36, %10 : vector<8x128xf32>
    %c0_18 = arith.constant 0 : index
    %c0_19 = arith.constant 0 : index
    %38 = vector.load %arg7[%c0_18, %c0_19] : memref<16x128xf32, #tpu.memory_space<vmem>>, vector<8x128xf32>
    tpu.vector_store %arg7[%c0_18, %c0_19], %37 {strides = array<i32>} : memref<16x128xf32, #tpu.memory_space<vmem>>, vector<8x128xf32>,
    %39 = vector.extract_strided_slice %2 {offsets = [8, 0], sizes = [8, 128], strides = [1, 1]} : vector<16x256xf32> to vector<8x128xf32>
    %40 = vector.extract_strided_slice %2 {offsets = [8, 128], sizes = [8, 128], strides = [1, 1]} : vector<16x256xf32> to vector<8x128xf32>
    %cst_20 = arith.constant dense<0.000000e+00> : vector<8x128xf32>
    %41 = tpu.matmul %3, %39, %cst_20 {dimension_numbers = #tpu.dot_dimension_numbers<[1], [0], [0], [1], [0, 0, 1, 1], [], []>} : vector<8x8xf32>, vector<8x128xf32>, vector<8x128xf32> -> vector<8x128xf32>
    %cst_21 = arith.constant dense<0.000000e+00> : vector<8x128xf32>
    %42 = tpu.matmul %4, %40, %cst_21 {dimension_numbers = #tpu.dot_dimension_numbers<[1], [0], [0], [1], [0, 0, 1, 1], [], []>} : vector<8x8xf32>, vector<8x128xf32>, vector<8x128xf32> -> vector<8x128xf32>
    %43 = arith.subf %41, %42 : vector<8x128xf32>
    %44 = vector.extract_strided_slice %0 {offsets = [8, 0], sizes = [8, 128], strides = [1, 1]} : vector<16x128xf32> to vector<8x128xf32>
    %45 = arith.addf %44, %43 : vector<8x128xf32>
    %cst_22 = arith.constant dense<0.000000e+00> : vector<8xf32>
    %46 = vector.multi_reduction <add>, %45, %cst_22 [1] : vector<8x128xf32> to vector<8xf32>
    %47 = vector.shape_cast %46 : vector<8xf32> to vector<8x1xf32>
    %48 = arith.mulf %45, %45 : vector<8x128xf32>
    %cst_23 = arith.constant dense<0.000000e+00> : vector<8xf32>
    %49 = vector.multi_reduction <add>, %48, %cst_23 [1] : vector<8x128xf32> to vector<8xf32>
    %50 = vector.shape_cast %49 : vector<8xf32> to vector<8x1xf32>
    %cst_24 = arith.constant 3.125000e-02 : f32
    %51 = vector.broadcast %cst_24 : f32 to vector<8x1xf32>
    %52 = arith.mulf %47, %51 : vector<8x1xf32>
    %cst_25 = arith.constant 3.125000e-02 : f32
    %53 = vector.broadcast %cst_25 : f32 to vector<8x1xf32>
    %54 = arith.mulf %50, %53 : vector<8x1xf32>
    %55 = arith.mulf %52, %52 : vector<8x1xf32>
    %56 = arith.subf %54, %55 : vector<8x1xf32>
    %57 = vector.broadcast %52 : vector<8x1xf32> to vector<8x128xf32>
    %58 = arith.subf %45, %57 : vector<8x128xf32>
    %cst_26 = arith.constant 9.99999974E-6 : f32
    %59 = vector.broadcast %cst_26 : f32 to vector<8x1xf32>
    %60 = arith.addf %56, %59 : vector<8x1xf32>
    %61 = math.rsqrt %60 : vector<8x1xf32>
    %62 = vector.broadcast %61 : vector<8x1xf32> to vector<8x128xf32>
    %63 = arith.mulf %58, %62 : vector<8x128xf32>
    %64 = arith.mulf %63, %7 : vector<8x128xf32>
    %65 = arith.addf %64, %10 : vector<8x128xf32>
    %c8 = arith.constant 8 : index
    %c0_27 = arith.constant 0 : index
    %66 = vector.load %arg7[%c8, %c0_27] : memref<16x128xf32, #tpu.memory_space<vmem>>, vector<8x128xf32>
    tpu.vector_store %arg7[%c8, %c0_27], %65 {strides = array<i32>} : memref<16x128xf32, #tpu.memory_space<vmem>>, vector<8x128xf32>,
    return
  }
  func.func @transform_0(%arg0: i32) -> (i32, i32) {
    %c0_i32 = arith.constant 0 : i32
    %c0_i32_0 = arith.constant 0 : i32
    return %arg0, %c0_i32 : i32, i32
  }
  func.func @transform_1(%arg0: i32) -> (i32, i32) {
    %c0_i32 = arith.constant 0 : i32
    %c0_i32_0 = arith.constant 0 : i32
    %c0_i32_1 = arith.constant 0 : i32
    return %c0_i32, %c0_i32_0 : i32, i32
  }
  func.func @transform_2(%arg0: i32) -> (i32, i32) {
    %c0_i32 = arith.constant 0 : i32
    %c0_i32_0 = arith.constant 0 : i32
    %c0_i32_1 = arith.constant 0 : i32
    return %c0_i32, %c0_i32_0 : i32, i32
  }
  func.func @transform_3(%arg0: i32) -> (i32, i32) {
    %c0_i32 = arith.constant 0 : i32
    %c0_i32_0 = arith.constant 0 : i32
    %c0_i32_1 = arith.constant 0 : i32
    return %c0_i32, %c0_i32_0 : i32, i32
  }
  func.func @transform_4(%arg0: i32) -> (i32, i32) {
    %c0_i32 = arith.constant 0 : i32
    %c0_i32_0 = arith.constant 0 : i32
    %c0_i32_1 = arith.constant 0 : i32
    return %c0_i32, %c0_i32_0 : i32, i32
  }
  func.func @transform_5(%arg0: i32) -> (i32, i32) {
    %c0_i32 = arith.constant 0 : i32
    %c0_i32_0 = arith.constant 0 : i32
    %c0_i32_1 = arith.constant 0 : i32
    return %c0_i32, %c0_i32_0 : i32, i32
  }
  func.func @transform_6(%arg0: i32) -> (i32, i32) {
    %c0_i32 = arith.constant 0 : i32
    %c0_i32_0 = arith.constant 0 : i32
    return %arg0, %c0_i32 : i32, i32
  }
}

</mosaic_0001>

<bundles_post_ra>
// kernel: tpu_custom_call.1
= control target key start
LH: loop header
LB: loop body
LE: loop exit
PB: predicated region body
PF: predicated region fallthrough
CT: control target
= control target key end

     0   :  { %11 = vsyncpa [#allocation3], 0  ;;  %s792_s0 = inlined_call_operand.hbm [shape: f32[16,128], index: 0, kind: input, shape index: {}]   ;;  %s793_s1 = inlined_call_operand.hbm [shape: f32[128,256], index: 1, kind: input, shape index: {}]   ;;  %s794_s2 = inlined_call_operand.hbm [shape: f32[8,8], index: 2, kind: input, shape index: {}]   ;;  %s795_s3 = inlined_call_operand.hbm [shape: f32[8,8], index: 3, kind: input, shape index: {}]   ;;  %s796_s4 = inlined_call_operand.vmem [shape: f32[1,128], index: 4, kind: input, shape index: {}]   ;;  %s797_s5 = inlined_call_operand.vmem [shape: f32[1,128], index: 5, kind: input, shape index: {}]   ;;  %s798_s6 = inlined_call_operand.hbm [shape: f32[16,128], index: 6, kind: output, shape index: {}]  }
   0x1   :  { %12 = vsyncpa [#allocation6], 0 }
   0x2   :  { %13 = vsyncpa [#allocation9], 0 }
   0x3   :  { %14 = vsyncpa [#allocation4], 0  ;;  %s701_s21 = smov [#allocation5]  }
   0x4   :  { %s32_s22 = sshll.u32 %s701_s21, 4  ;;  %s33_s22 = int_to_ptr.vmem [resolvable:$true] %s32_s22 }
   0x5   :  { %s601_s23 = scalar_lea.vmem %s33_s22, 4096  ;;  %p606_p1 = scmp.lt.s32.totalorder %s33_s22, %s33_s22 }
   0x6   :  { %p602_p0 = scmp.ne.s32.totalorder %s33_s22, %s601_s23  ;;  %p607_p2 = scmp.lt.s32.totalorder %s601_s23, %s601_s23 }
   0x8   :  { %p608_p3 = por %p607_p2, %p606_p1 }
   0xa   :  { %p609_p4 = pnand %p608_p3, %p602_p0 }
   0xc   :  { %612 = shalt.err (!%p609_p4)
}
   0xd   :  { %s702_s24 = smov 256   ;;  %s703_s25 = smov 16  }
   0xe   :  { %38 = dma.hbm_to_vmem [thread:$0]  %s793_s1, 4096, %s33_s22, [#allocation6], %s702_s24, %s702_s24, %s703_s25  }
   0xf   :  { %s704_s28 = smov [#allocation2]  }
  0x10   :  { %s20_s29 = sshll.u32 %s704_s28, 4  ;;  %s21_s29 = int_to_ptr.vmem [resolvable:$true] %s20_s29 }
  0x11   :  { %s621_s30 = scalar_lea.vmem %s21_s29, 256  ;;  %p626_p6 = scmp.lt.s32.totalorder %s21_s29, %s21_s29 }
  0x12   :  { %p622_p5 = scmp.ne.s32.totalorder %s21_s29, %s621_s30  ;;  %p627_p7 = scmp.lt.s32.totalorder %s621_s30, %s621_s30 }
  0x14   :  { %p628_p8 = por %p627_p7, %p626_p6 }
  0x16   :  { %p629_p9 = pnand %p628_p8, %p622_p5 }
  0x18   :  { %632 = shalt.err (!%p629_p9)
}
  0x19   :  { %s705_s7 = smov 128   ;;  %s706_s8 = smov 8  }
  0x1a   :  { %26 = dma.hbm_to_vmem [thread:$0]  %s792_s0, 256, %s21_s29, [#allocation3], %s705_s7, %s705_s7, %s706_s8  }
  0x1b   :  { %s707_s1 = smov [#allocation7]   ;;  %s708_s12 = smov [#allocation8]  }
  0x1c   :  { %s45_s11 = sshll.u32 %s707_s1, 4  ;;  %s55_s13 = sshll.u32 %s708_s12, 4  ;;  %s46_s11 = int_to_ptr.vmem [resolvable:$true] %s45_s11  ;;  %s56_s13 = int_to_ptr.vmem [resolvable:$true] %s55_s13 }
  0x1d   :  { %s641_s14 = scalar_lea.vmem %s46_s11, 128  ;;  %p646_p11 = scmp.lt.s32.totalorder %s46_s11, %s46_s11 }
  0x1e   :  { %p642_p10 = scmp.ne.s32.totalorder %s46_s11, %s641_s14  ;;  %p647_p12 = scmp.lt.s32.totalorder %s641_s14, %s641_s14 }
  0x20   :  { %p648_p13 = por %p647_p12, %p646_p11 }
  0x22   :  { %p649_p0 = pnand %p648_p13, %p642_p10 }
  0x24   :  { %652 = shalt.err (!%p649_p0)
}
  0x25   :  { %48 = dma.hbm_to_vmem [thread:$0]  %s794_s2, 128, %s46_s11, [#allocation6]  }
  0x26   :  { %s661_s17 = scalar_lea.vmem %s56_s13, 128  ;;  %p666_p2 = scmp.lt.s32.totalorder %s56_s13, %s56_s13 }
  0x27   :  { %p662_p1 = scmp.ne.s32.totalorder %s56_s13, %s661_s17  ;;  %p667_p3 = scmp.lt.s32.totalorder %s661_s17, %s661_s17 }
  0x29   :  { %p668_p4 = por %p667_p3, %p666_p2 }
  0x2b   :  { %p669_p5 = pnand %p668_p4, %p662_p1 }
  0x2d   :  { %672 = shalt.err (!%p669_p5)
}
  0x2e   :  { %58 = dma.hbm_to_vmem [thread:$0]  %s795_s3, 128, %s56_s13, [#allocation9]  }
  0x2f   :  { %693 = dma.done.wait [#allocation3], 256  }
  0x30   :  { %694 = vsyncadd [#allocation3], 4294967040 }
  0x31   :  { %695 = dma.done.wait [#allocation6], 4224  }
  0x32   :  { %696 = vsyncadd [#allocation6], 4294963072 }
  0x33   :  { %697 = dma.done.wait [#allocation9], 128  }
  0x34   :  { %698 = vsyncadd [#allocation9], 4294967168  ;;  %v709_v0 = vmov 0.0   ;;  %v108_v1 = vld [vmem:[#allocation5 + $0xf8] sm:$0xff]  ;;  %v107_v2 = vld [vmem:[#allocation5 + $0xf0] sm:$0xff]  ;;  %vm710_vm0 = vmmov 0  }
  0x35   :  { %173 = vmatprep.mubr.f32.mxu0 %v709_v0  ;;  %558 = vmatprep.subr.mxu1 %v709_v0  ;;  %v106_v3 = vld [vmem:[#allocation5 + $0xe8] sm:$0xff]  ;;  %v105_v4 = vld [vmem:[#allocation5 + $0xe0] sm:$0xff]  ;;  %v104_v5 = vld [vmem:[#allocation5 + $0xd8] sm:$0xff]  ;;  %vm202_vm1 = vcmask 64512   ;;  %s711_s21 = smov [#allocation10]  }
  0x36   :  { %109 = vmatprep.subr.mxu0 %v108_v1  ;;  %v103_v6 = vld [vmem:[#allocation5 + $0xd0] sm:$0xff]  ;;  %v102_v7 = vld [vmem:[#allocation5 + $0xc8] sm:$0xff]  ;;  %v101_v8 = vld [vmem:[#allocation5 + $0xc0] sm:$0xff]  ;;  %560 = vmatprep.mubr.msk.f32.mxu1 %vm710_vm0, %v709_v0  ;;  %s530_s22 = sshll.u32 %s711_s21, 4  ;;  %s531_s22 = int_to_ptr.vmem [resolvable:$true] %s530_s22 }
  0x37   :  { %110 = vmatpush1.msra.mxu0 %v107_v2  ;;  %v100_v9 = vld [vmem:[#allocation5 + $0xb8] sm:$0xff]  ;;  %v99_v10 = vld [vmem:[#allocation5 + $0xb0] sm:$0xff]  ;;  %v98_v11 = vld [vmem:[#allocation5 + $0xa8] sm:$0xff]  ;;  %s673_s23 = scalar_lea.vmem %s531_s22, 256  ;;  %p678_p7 = scmp.lt.s32.totalorder %s531_s22, %s531_s22 }
  0x38   :  { %111 = vmatprep.subr.mxu0 %v106_v3  ;;  %v97_v12 = vld [vmem:[#allocation5 + $0xa0] sm:$0xff]  ;;  %v96_v13 = vld [vmem:[#allocation5 + $0x98] sm:$0xff]  ;;  %v95_v14 = vld [vmem:[#allocation5 + $0x90] sm:$0xff]  ;;  %p674_p6 = scmp.ne.s32.totalorder %s531_s22, %s673_s23  ;;  %p679_p8 = scmp.lt.s32.totalorder %s673_s23, %s673_s23 }
  0x39   :  { %112 = vmatpush1.msra.mxu0 %v105_v4  ;;  %v94_v15 = vld [vmem:[#allocation5 + $0x88] sm:$0xff]  ;;  %v93_v16 = vld [vmem:[#allocation5 + $0x80] sm:$0xff]  ;;  %v92_v17 = vld [vmem:[#allocation5 + $0x78] sm:$0xff] }
  0x3a   :  { %113 = vmatprep.subr.mxu0 %v104_v5  ;;  %v91_v18 = vld [vmem:[#allocation5 + $0x70] sm:$0xff]  ;;  %v90_v19 = vld [vmem:[#allocation5 + $0x68] sm:$0xff]  ;;  %v89_v20 = vld [vmem:[#allocation5 + $0x60] sm:$0xff]  ;;  %p680_p9 = por %p679_p8, %p678_p7 }
  0x3b   :  { %114 = vmatpush1.msra.mxu0 %v103_v6  ;;  %v88_v21 = vld [vmem:[#allocation5 + $0x58] sm:$0xff]  ;;  %v87_v22 = vld [vmem:[#allocation5 + $0x50] sm:$0xff]  ;;  %v86_v23 = vld [vmem:[#allocation5 + $0x48] sm:$0xff] }
  0x3c   :  { %115 = vmatprep.subr.mxu0 %v102_v7  ;;  %v85_v24 = vld [vmem:[#allocation5 + $0x40] sm:$0xff]  ;;  %v84_v25 = vld [vmem:[#allocation5 + $0x38] sm:$0xff]  ;;  %v83_v26 = vld [vmem:[#allocation5 + $0x30] sm:$0xff]  ;;  %p681_p10 = pnand %p680_p9, %p674_p6 }
  0x3d   :  { %116 = vmatpush1.msra.mxu0 %v101_v8  ;;  %v82_v27 = vld [vmem:[#allocation5 + $0x28] sm:$0xff]  ;;  %v81_v28 = vld [vmem:[#allocation5 + $0x20] sm:$0xff]  ;;  %v80_v29 = vld [vmem:[#allocation5 + $0x18] sm:$0xff] }
  0x3e   :  { %117 = vmatprep.subr.mxu0 %v100_v9  ;;  %v79_v30 = vld [vmem:[#allocation5 + $0x10] sm:$0xff]  ;;  %v78_v31 = vld [vmem:[#allocation5 + $0x8] sm:$0xff]  ;;  %v77_v32 = vld [vmem:[#allocation5] sm:$0xff] }
  0x3f   :  { %118 = vmatpush1.msra.mxu0 %v99_v10  ;;  %v75_v33 = vld [vmem:[#allocation2] sm:$0xff]  ;;  %v76_v34 = vld [vmem:[#allocation2 + $0x8] sm:$0xff]  ;;  %v186_v35 = vld [vmem:[#allocation7] sm:$0xff] }
  0x40   :  { %119 = vmatprep.subr.mxu0 %v98_v11  ;;  %v187_v38 = vld [vmem:[#allocation8] sm:$0xff]  ;;  %v544_v7 = vld [vmem:[%s796_s4] ss:$0 sm:$0xff] }
  0x41   :  { %120 = vmatpush1.msra.mxu0 %v97_v12  ;;  %v545_v9 = vld [vmem:[%s797_s5] ss:$0 sm:$0xff] }
  0x42   :  { %121 = vmatprep.subr.mxu0 %v96_v13 }
  0x43   :  { %122 = vmatpush1.msra.mxu0 %v95_v14 }
  0x44   :  { %123 = vmatprep.subr.mxu0 %v94_v15 }
  0x45   :  { %124 = vmatpush1.msra.mxu0 %v93_v16 }
  0x46   :  { %125 = vmatprep.subr.mxu0 %v92_v17 }
  0x47   :  { %126 = vmatpush1.msra.mxu0 %v91_v18 }
  0x48   :  { %127 = vmatprep.subr.mxu0 %v90_v19 }
  0x49   :  { %128 = vmatpush1.msra.mxu0 %v89_v20 }
  0x4a   :  { %129 = vmatprep.subr.mxu0 %v88_v21 }
  0x4b   :  { %130 = vmatpush1.msra.mxu0 %v87_v22 }
  0x4c   :  { %131 = vmatprep.subr.mxu0 %v86_v23 }
  0x4d   :  { %132 = vmatpush1.msra.mxu0 %v85_v24 }
  0x4e   :  { %133 = vmatprep.subr.mxu0 %v84_v25 }
  0x4f   :  { %134 = vmatpush1.msra.mxu0 %v83_v26 }
  0x50   :  { %135 = vmatprep.subr.mxu0 %v82_v27 }
  0x51   :  { %136 = vmatpush1.msra.mxu0 %v81_v28 }
  0x52   :  { %137 = vmatprep.subr.mxu0 %v80_v29 }
  0x53   :  { %138 = vmatpush1.msra.mxu0 %v79_v30 }
  0x54   :  { %139 = vmatprep.subr.mxu0 %v78_v31 }
  0x55   :  { %140 = vmatpush1.msra.mxu0 %v77_v32 }
  0x56   :  { %174 = vmatmul.mubr.f32.vlgmr.msra.gmra.mxu0 %v75_v33 }
  0x57   :  { %179 = vmatprep.mubr.f32.mxu0 %v709_v0 }
  0x5a   :  { %180 = vmatmul.mubr.f32.gmra.mxu0 %v76_v34 }
 0x116   :  { %v175_v36 = vpop.f32.mrf.mxu0 }
 0x117   :  { %559 = vmatpush3.msra.mxu1 %v175_v36 }
 0x118   :  { %v177_v37 = vpop.f32.mrf.mxu0  ;;  %561 = vmatmul.mubr.msk.f32.vlgmr.msra.gmra.mxu1 %vm202_vm1, %v186_v35  ;;  %563 = vmatprep.subr.mxu1 %v709_v0 }
 0x119   :  { %564 = vmatpush3.msra.mxu1 %v177_v37  ;;  %565 = vmatprep.mubr.msk.f32.mxu1 %vm710_vm0, %v709_v0 }
 0x11a   :  { %v181_v39 = vpop.f32.mrf.mxu0  ;;  %568 = vmatprep.subr.mxu1 %v709_v0 }
 0x11c   :  { %566 = vmatmul.mubr.msk.f32.vlgmr.msra.gmra.mxu1 %vm202_vm1, %v187_v38  ;;  %v183_v40 = vpop.f32.mrf.mxu0 }
 0x11d   :  { %569 = vmatpush3.msra.mxu1 %v181_v39  ;;  %570 = vmatprep.mubr.msk.f32.mxu1 %vm710_vm0, %v709_v0 }
 0x11e   :  { %573 = vmatprep.subr.mxu1 %v709_v0 }
 0x120   :  { %571 = vmatmul.mubr.msk.f32.vlgmr.msra.gmra.mxu1 %vm202_vm1, %v186_v35 }
 0x121   :  { %574 = vmatpush3.msra.mxu1 %v183_v40  ;;  %575 = vmatprep.mubr.msk.f32.mxu1 %vm710_vm0, %v709_v0 }
 0x124   :  { %576 = vmatmul.mubr.msk.f32.vlgmr.msra.gmra.mxu1 %vm202_vm1, %v187_v38 }
 0x1d8   :  { %v272_v41 = vpop.f32.mrf.mxu1 }
 0x1da   :  { %v562_v42 = vpop.f32.mrf.mxu1 }
 0x1dc   :  { %v345_v43 = vpop.f32.mrf.mxu1 }
 0x1dd   :  { %v349_v44 = vsub.f32 %v272_v41, %v345_v43 }
 0x1de   :  { %v567_v45 = vpop.f32.mrf.mxu1 }
 0x1df   :  { %v350_v46 = vadd.f32 %v349_v44, %v75_v33 }
 0x1e0   :  { %v433_v47 = vpop.f32.mrf.mxu1 }
 0x1e1   :  { %351 = vadd.xlane.f32.xlu0 %v350_v46  ;;  %v353_v48 = vmul.f32 %v350_v46, %v350_v46 }
 0x1e2   :  { %v572_v49 = vpop.f32.mrf.mxu1 }
 0x1e3   :  { %354 = vadd.xlane.f32.xlu1 %v353_v48 }
 0x1e4   :  { %v503_v50 = vpop.f32.mrf.mxu1 }
 0x1e5   :  { %v507_v51 = vsub.f32 %v433_v47, %v503_v50 }
 0x1e6   :  { %v577_v52 = vpop.f32.mrf.mxu1 }
 0x1e7   :  { %v508_v53 = vadd.f32 %v507_v51, %v76_v34 }
 0x1e9   :  { %509 = vadd.xlane.f32.xlu0 %v508_v53  ;;  %v511_v54 = vmul.f32 %v508_v53, %v508_v53 }
 0x1eb   :  { %512 = vadd.xlane.f32.xlu1 %v511_v54 }
 0x26a   :  { %v352_v55 = vpop.xlane.xlu0 %351 }
 0x26b   :  { %v356_v56 = vmul.f32 0.03125, %v352_v55 }
 0x26c   :  { %v355_v57 = vpop.xlane.xlu1 %354 }
 0x26d   :  { %v358_v58 = vmul.f32 %v356_v56, %v356_v56  ;;  %v357_v59 = vmul.f32 0.03125, %v355_v57  ;;  %v360_v5 = vsub.f32 %v350_v46, %v356_v56 }
 0x26f   :  { %v359_v60 = vsub.f32 %v357_v59, %v358_v58 }
 0x271   :  { %v361_v61 = vadd.f32 1e-05, %v359_v60 }
 0x272   :  { %v510_v62 = vpop.xlane.xlu0 %509 }
 0x273   :  { %589 = vrsqrt.f32 %v361_v61  ;;  %v514_v63 = vmul.f32 0.03125, %v510_v62 }
 0x274   :  { %v513_v0 = vpop.xlane.xlu1 %512 }
 0x275   :  { %v516_v1 = vmul.f32 %v514_v63, %v514_v63  ;;  %v515_v2 = vmul.f32 0.03125, %v513_v0  ;;  %v518_v12 = vsub.f32 %v508_v53, %v514_v63 }
 0x277   :  { %v517_v3 = vsub.f32 %v515_v2, %v516_v1 }
 0x279   :  { %v519_v4 = vadd.f32 1e-05, %v517_v3 }
 0x27b   :  { %591 = vrsqrt.f32 %v519_v4 }
 0x280   :  { %v590_v6 = vpop.eup %589 }
 0x281   :  { %v363_v8 = vmul.f32 %v590_v6, %v360_v5 }
 0x283   :  { %v364_v10 = vmul.f32 %v544_v7, %v363_v8 }
 0x285   :  { %v365_v11 = vadd.f32 %v545_v9, %v364_v10 }
 0x287   :  { %366 = vst [vmem:[#allocation10] sm:$0xff] %v365_v11 }
 0x288   :  { %v592_v13 = vpop.eup %591 }
 0x289   :  { %v521_v14 = vmul.f32 %v592_v13, %v518_v12 }
 0x28b   :  { %v522_v15 = vmul.f32 %v544_v7, %v521_v14 }
 0x28d   :  { %v523_v16 = vadd.f32 %v545_v9, %v522_v15 }
 0x28f   :  { %524 = vst [vmem:[#allocation10 + $0x8] sm:$0xff] %v523_v16 }
 0x290   :  { %684 = shalt.err (!%p681_p10)
}
 0x291   :  { %536 = dma.vmem_to_hbm [thread:$0]  %s531_s22, 256, %s798_s6, [#allocation4], %s705_s7, %s705_s7, %s706_s8  }
 0x292   :  { %699 = dma.done.wait [#allocation4], 256  }
 0x293   :  { %700 = vsyncadd [#allocation4], 4294967040 }
 0x294   :  { %540 = vsyncpa [#allocation3], 1 }
 0x295   :  { %541 = vsyncpa [#allocation6], 1 }
 0x296   :  { %542 = vsyncpa [#allocation9], 1 }
 0x297   :  { %543 = vsyncpa [#allocation4], 1 }

</bundles_post_ra>
